<compile_context>
chip_gen: v7x
topology: tpu7x:2x2x1
jax: 0.10.0
libtpu: 0.0.40
codegen_flags: <defaults>
</compile_context>

<pallas_src>
import jax
import jax.numpy as jnp
from jax.experimental import pallas as pl
from jax.experimental.pallas import tpu as pltpu


def _round_up(v, m):
    return ((v + m - 1) // m) * m


def _support_kernel(x_ref, w_ref, out_ref):
    # support = x @ W, row-block tiled; F_out already lane-padded to 128*k.
    out_ref[...] = jnp.dot(x_ref[...], w_ref[...],
                           preferred_element_type=jnp.float32)


def _make_gcn_kernel(block, n_blk, support_resident):
    def kernel(counts_ref, kmap_ref,                  # scalar prefetch (SMEM)
               a_ref, b_ref, mask_ref, sup_ref, bias_ref,
               out_ref):
        i = pl.program_id(0)          # output row block
        k = pl.program_id(1)          # reduction (adjacency column) block

        @pl.when(k == 0)
        def _init():
            out_ref[...] = jnp.zeros_like(out_ref)

        # Skip tiles that contain no edges (their adjacency tile is exactly 0).
        # The corresponding DMAs are elided via the kmap-based index_maps.
        @pl.when(counts_ref[i * n_blk + k] > 0)
        def _compute():
            # Augmented matmul: dot(a_aug, b_aug.T)[m, n] ==
            #   -0.5 * sig * ||x_src[m] - x_dst[n] - mu||^2   (the exponent).
            expo = jnp.dot(a_ref[...], b_ref[...].T,
                           preferred_element_type=jnp.float32,
                           precision=jax.lax.Precision.HIGHEST)
            # Exponent must be <= 0; clamp f32 cancellation noise so the huge
            # sig cannot inflate exp() above 1.
            expo = jnp.minimum(expo, 0.0)
            adj = mask_ref[...].astype(jnp.float32) * jnp.exp(expo)
            if support_resident:
                off = pl.multiple_of(k * block, block)
                sup = sup_ref[pl.ds(off, block), :]
            else:
                sup = sup_ref[...]
            out_ref[...] += jnp.dot(adj, sup,
                                    preferred_element_type=jnp.float32)

        @pl.when(k == pl.num_programs(1) - 1)
        def _finalize():
            out_ref[...] += bias_ref[...]

    return kernel


def graph_convolution(x, edge_idx, weight, bias, mu, sig, *, emb_size,
                      block=512, vmem_limit_bytes=None,
                      support_resident_bytes=4 * 1024 * 1024):
    """x: (N, F_in) f32, edge_idx: (2, E) int32, weight: (F_in, F_out),
    bias: (F_out,), mu: (emb_size,), sig: scalar. Returns (N, F_out) f32.

    block: adjacency tile edge length (512 default; sweep 1024 on v6e with
    vmem_limit_bytes ~ 64<<20, cap at 512-1024 on v7x)."""
    n, f_in = x.shape
    f_out = weight.shape[1]

    block = min(block, _round_up(n, 128))
    n_pad = _round_up(n, block)
    f_out_pad = _round_up(f_out, 128)      # lane-dense output / MXU N dim
    n_blk = n_pad // block
    emb_aug = emb_size + 2

    x = x.astype(jnp.float32)
    x_pad = jnp.zeros((n_pad, f_in), jnp.float32).at[:n].set(x)

    # ---- plain-JAX glue: data-dependent scatters (no clean Pallas equivalent).
    src = edge_idx[0].astype(jnp.int32)
    dst = edge_idx[1].astype(jnp.int32)
    # Dense edge-multiplicity mask in int8 (duplicates sum, matching
    # torch.sparse.mm on an uncoalesced tensor). Assumes <= 127 duplicates of
    # any single (src, dst) pair; use int16 if that can be exceeded.
    mask = (jnp.zeros((n_pad, n_pad), jnp.int32)
            .at[src, dst].add(1).astype(jnp.int8))
    # Per-(row-block, col-block) edge counts -> scalar-prefetched tile skip map.
    counts2d = (jnp.zeros((n_blk, n_blk), jnp.int32)
                .at[src // block, dst // block].add(1))
    # kmap[i, k]: column block whose data is DMA'd at grid step (i, k). Equal to
    # k for non-empty tiles; for empty tiles it repeats a neighbouring non-empty
    # index so Pallas elides the DMA (block index unchanged between steps).
    kidx = jnp.arange(n_blk, dtype=jnp.int32)
    ne = counts2d > 0
    last_ne = jax.lax.cummax(jnp.where(ne, kidx[None, :], -1), axis=1)
    first_ne = jax.lax.cummin(jnp.where(ne, kidx[None, :], n_blk), axis=1,
                              reverse=True)
    kmap2d = jnp.where(last_ne >= 0, last_ne,
                       jnp.where(first_ne < n_blk, first_ne, 0)).astype(jnp.int32)
    counts1d = counts2d.reshape(-1)        # 1D -> no 2D SMEM lane padding
    kmap1d = kmap2d.reshape(-1)

    # ---- augmented operands for the pairwise Gaussian (wrapper-side O(N*emb)):
    #   exponent_ij = -0.5*sig*||a_i - b_j||^2 = dot(a_aug_i, b_aug_j)
    # with a_i = x_i[:emb] (centered), b_j = x_j[:emb] + mu (centered).
    sig_f = jnp.asarray(sig, jnp.float32)
    s = 0.5 * sig_f
    coords = x[:, :emb_size]
    cmean = jnp.mean(coords, axis=0, keepdims=True)   # centering: diffs unchanged
    a_c = coords - cmean
    b_c = coords + mu.astype(jnp.float32)[None, :] - cmean
    ones = jnp.ones((n, 1), jnp.float32)
    a_aug = jnp.concatenate(
        [2.0 * s * a_c, -s * jnp.sum(a_c * a_c, axis=1, keepdims=True), ones],
        axis=1)
    b_aug = jnp.concatenate(
        [b_c, ones, -s * jnp.sum(b_c * b_c, axis=1, keepdims=True)], axis=1)
    a_aug = jnp.zeros((n_pad, emb_aug), jnp.float32).at[:n].set(a_aug)
    b_aug = jnp.zeros((n_pad, emb_aug), jnp.float32).at[:n].set(b_aug)

    w_pad = jnp.zeros((f_in, f_out_pad), jnp.float32).at[:, :f_out].set(
        weight.astype(jnp.float32))
    bias_row = jnp.zeros((1, f_out_pad), jnp.float32).at[0, :f_out].set(
        bias.astype(jnp.float32))

    # ---- phase 1: support = x @ W (paid once, not once per reduction step).
    support = pl.pallas_call(
        _support_kernel,
        out_shape=jax.ShapeDtypeStruct((n_pad, f_out_pad), jnp.float32),
        grid_spec=pltpu.PrefetchScalarGridSpec(
            num_scalar_prefetch=0,
            grid=(n_blk,),
            in_specs=[pl.BlockSpec((block, f_in), lambda i: (i, 0)),
                      pl.BlockSpec((f_in, f_out_pad), lambda i: (0, 0))],
            out_specs=pl.BlockSpec((block, f_out_pad), lambda i: (i, 0))),
        compiler_params=pltpu.CompilerParams(
            dimension_semantics=("parallel",)),
    )(x_pad, w_pad)

    # ---- phase 2: out = adj @ support + bias, tiled (row blocks x reduction).
    support_resident = (n_pad * f_out_pad * 4) <= support_resident_bytes
    if support_resident:
        # Constant block index -> fetched once, stays VMEM-resident; sliced
        # per reduction step inside the kernel.
        sup_spec = pl.BlockSpec((n_pad, f_out_pad),
                                lambda i, k, cnt, km: (0, 0))
    else:
        sup_spec = pl.BlockSpec(
            (block, f_out_pad),
            lambda i, k, cnt, km: (km[i * n_blk + k], 0))

    out_pad = pl.pallas_call(
        _make_gcn_kernel(block, n_blk, support_resident),
        out_shape=jax.ShapeDtypeStruct((n_pad, f_out_pad), jnp.float32),
        grid_spec=pltpu.PrefetchScalarGridSpec(
            num_scalar_prefetch=2,                 # counts + kmap -> SMEM
            grid=(n_blk, n_blk),
            in_specs=[
                pl.BlockSpec((block, emb_aug),
                             lambda i, k, cnt, km: (i, 0)),                    # a_aug
                pl.BlockSpec((block, emb_aug),
                             lambda i, k, cnt, km: (km[i * n_blk + k], 0)),    # b_aug
                pl.BlockSpec((block, block),
                             lambda i, k, cnt, km: (i, km[i * n_blk + k])),    # mask
                sup_spec,                                                      # support
                pl.BlockSpec((1, f_out_pad), lambda i, k, cnt, km: (0, 0)),    # bias
            ],
            out_specs=pl.BlockSpec((block, f_out_pad),
                                   lambda i, k, cnt, km: (i, 0))),
        compiler_params=pltpu.CompilerParams(
            dimension_semantics=("parallel", "arbitrary"),
            vmem_limit_bytes=vmem_limit_bytes),
    )(counts1d, kmap1d, a_aug, b_aug, mask, support, bias_row)

    return out_pad[:n, :f_out]


def _reference(x, edge_idx, weight, bias, mu, sig, emb_size):
    """Pure-JAX reference matching the PyTorch forward."""
    support = x @ weight
    domain = x[:, :emb_size]
    diff = domain[edge_idx[0]] - domain[edge_idx[1]]
    value = jnp.exp(sig * (-0.5 * jnp.sum((diff - mu) ** 2, axis=1)))
    n = x.shape[0]
    adj = jnp.zeros((n, n), jnp.float32).at[edge_idx[0], edge_idx[1]].add(value)
    return adj @ support + bias


if __name__ == "__main__":
    # Module hyper-parameters (ker_size is unused in forward).
    in_features, out_features, emb_size, ker_size = 8, 32, 3, 5
    n_nodes, n_edges = 16, 40

    key = jax.random.PRNGKey(0)
    k_x, k_w, k_b, k_mu, k_src, k_dst = jax.random.split(key, 6)

    # Node features; first 3 columns act as spatial coordinates.
    x = jax.random.normal(k_x, (n_nodes, in_features), jnp.float32) * 0.01

    # Deterministic parameter init, matching reset_parameters() distributions.
    weight = jax.random.normal(k_w, (in_features, out_features), jnp.float32) * 0.1
    bias = jax.random.normal(k_b, (out_features,), jnp.float32) * 0.1
    mu = jax.random.normal(k_mu, (emb_size,), jnp.float32) * 0.005
    sig = jnp.array(60140.0, jnp.float32)

    # Deterministic random edge index (2, E), plus self-loops appended.
    src = jax.random.randint(k_src, (n_edges,), 0, n_nodes, jnp.int32)
    dst = jax.random.randint(k_dst, (n_edges,), 0, n_nodes, jnp.int32)
    loops = jnp.arange(n_nodes, dtype=jnp.int32)
    edge_idx = jnp.stack(
        [jnp.concatenate([src, loops]), jnp.concatenate([dst, loops])], axis=0)

    out = graph_convolution(x, edge_idx, weight, bias, mu, sig,
                            emb_size=emb_size)
    jax.block_until_ready(out)

    ref = _reference(x, edge_idx, weight, bias, mu, sig, emb_size)
    assert out.shape == (n_nodes, out_features)
    assert jnp.all(jnp.isfinite(out))
    assert jnp.allclose(out, ref, rtol=2e-3, atol=1e-4), (
        float(jnp.max(jnp.abs(out - ref))))
    print("KERNEL_OK")
</pallas_src>

<mosaic_0001>
module attributes {stable_mosaic.version = 11 : i64} {
  func.func @_support_kernel(%arg0: i32, %arg1: memref<128x8xf32, #tpu.memory_space<vmem>>, %arg2: memref<8x128xf32, #tpu.memory_space<vmem>>, %arg3: memref<128x128xf32, #tpu.memory_space<vmem>>) attributes {dimension_semantics = [#tpu.dimension_semantics<parallel>], iteration_bounds = array<i64: 1>, scalar_prefetch = 0 : i64, scratch_operands = 0 : i64, tpu.core_type = #tpu.core_type<tc>, window_params = [{transform_indices = @transform_0, window_bounds = array<i64: 128, 8>}, {pipeline_mode = #tpu.pipeline_mode<synchronous>, transform_indices = @transform_1, window_bounds = array<i64: 8, 128>}, {transform_indices = @transform_2, window_bounds = array<i64: 128, 128>}]} {
    %c0 = arith.constant 0 : index
    %c0_0 = arith.constant 0 : index
    %0 = vector.load %arg1[%c0, %c0_0] : memref<128x8xf32, #tpu.memory_space<vmem>>, vector<128x8xf32>
    %c0_1 = arith.constant 0 : index
    %c0_2 = arith.constant 0 : index
    %1 = vector.load %arg2[%c0_1, %c0_2] : memref<8x128xf32, #tpu.memory_space<vmem>>, vector<8x128xf32>
    %cst = arith.constant dense<0.000000e+00> : vector<128x128xf32>
    %2 = tpu.matmul %0, %1, %cst {dimension_numbers = #tpu.dot_dimension_numbers<[1], [0], [0], [1], [0, 0, 1, 1], [], []>} : vector<128x8xf32>, vector<8x128xf32>, vector<128x128xf32> -> vector<128x128xf32>
    %c0_3 = arith.constant 0 : index
    %c0_4 = arith.constant 0 : index
    %3 = vector.load %arg3[%c0_3, %c0_4] : memref<128x128xf32, #tpu.memory_space<vmem>>, vector<128x128xf32>
    tpu.vector_store %arg3[%c0_3, %c0_4], %2 {strides = array<i32>} : memref<128x128xf32, #tpu.memory_space<vmem>>, vector<128x128xf32>,
    return
  }
  func.func @transform_0(%arg0: i32) -> (i32, i32) {
    %c0_i32 = arith.constant 0 : i32
    %c0_i32_0 = arith.constant 0 : i32
    return %arg0, %c0_i32 : i32, i32
  }
  func.func @transform_1(%arg0: i32) -> (i32, i32) {
    %c0_i32 = arith.constant 0 : i32
    %c0_i32_0 = arith.constant 0 : i32
    %c0_i32_1 = arith.constant 0 : i32
    return %c0_i32, %c0_i32_0 : i32, i32
  }
  func.func @transform_2(%arg0: i32) -> (i32, i32) {
    %c0_i32 = arith.constant 0 : i32
    %c0_i32_0 = arith.constant 0 : i32
    return %arg0, %c0_i32 : i32, i32
  }
}

</mosaic_0001>

<bundles_post_ra>
// kernel: tpu_custom_call.1
= control target key start
LH: loop header
LB: loop body
LE: loop exit
PB: predicated region body
PF: predicated region fallthrough
CT: control target
= control target key end

     0   :  { %vm29_vm0 = vcmask 64512   ;;  %s440_s0 = inlined_call_operand.vmem [shape: f32[128,8], index: 0, kind: input, shape index: {}]   ;;  %s441_s1 = inlined_call_operand.vmem [shape: f32[8,128], index: 1, kind: input, shape index: {}]   ;;  %s442_s2 = inlined_call_operand.hbm [shape: f32[128,128], index: 2, kind: output, shape index: {}]  }
   0x1   :  { %v28_v0 = vld [vmem:[%s441_s1] sm:$0xff]  ;;  %v13_v3 = vld [vmem:[%s440_s0 + $0x8] sm:$0xff]  ;;  %v14_v5 = vld [vmem:[%s440_s0 + $0x10] sm:$0xff] }
   0x2   :  { %v12_v1 = vld [vmem:[%s440_s0] sm:$0xff]  ;;  %288 = vmatprep.subr.mxu0 %v28_v0  ;;  %314 = vmatprep.subr.mxu1 %v28_v0  ;;  %v21_v4 = vld [vmem:[%s440_s0 + $0x48] sm:$0xff]  ;;  %v22_v6 = vld [vmem:[%s440_s0 + $0x50] sm:$0xff] }
   0x3   :  { %v20_v2 = vld [vmem:[%s440_s0 + $0x40] sm:$0xff]  ;;  %289 = vmatpush3.msra.mxu0 %v28_v0  ;;  %315 = vmatpush3.msra.mxu1 %v28_v0  ;;  %v15_v7 = vld [vmem:[%s440_s0 + $0x18] sm:$0xff] }
   0x4   :  { %290 = vmatprep.mubr.msk.f32.mxu0 %vm29_vm0, %v12_v1  ;;  %302 = vmatprep.mubr.msk.f32.mxu1 %vm29_vm0, %v20_v2  ;;  %v23_v8 = vld [vmem:[%s440_s0 + $0x58] sm:$0xff] }
   0x5   :  { %291 = vmatmul.mubr.msk.f32.vlgmr.msra.gmra.mrb[0].mxu0 %vm29_vm0, %v13_v3  ;;  %303 = vmatmul.mubr.msk.f32.vlgmr.msra.gmra.mrb[0].mxu1 %vm29_vm0, %v21_v4 }
   0x6   :  { %293 = vmatprep.mubr.msk.f32.mxu0 %vm29_vm0, %v14_v5  ;;  %305 = vmatprep.mubr.msk.f32.mxu1 %vm29_vm0, %v22_v6 }
   0x7   :  { %7 = vsyncpa [#allocation3], 0  ;;  %v16_v9 = vld [vmem:[%s440_s0 + $0x20] sm:$0xff]  ;;  %v17_v11 = vld [vmem:[%s440_s0 + $0x28] sm:$0xff] }
   0x8   :  { %v24_v10 = vld [vmem:[%s440_s0 + $0x60] sm:$0xff]  ;;  %v25_v12 = vld [vmem:[%s440_s0 + $0x68] sm:$0xff]  ;;  %v18_v13 = vld [vmem:[%s440_s0 + $0x30] sm:$0xff] }
   0x9   :  { %294 = vmatmul.mubr.msk.f32.gmra.mrb[2].mxu0 %vm29_vm0, %v15_v7  ;;  %306 = vmatmul.mubr.msk.f32.gmra.mrb[2].mxu1 %vm29_vm0, %v23_v8  ;;  %v26_v14 = vld [vmem:[%s440_s0 + $0x70] sm:$0xff]  ;;  %v19_v15 = vld [vmem:[%s440_s0 + $0x38] sm:$0xff] }
   0xa   :  { %296 = vmatprep.mubr.msk.f32.mxu0 %vm29_vm0, %v16_v9  ;;  %308 = vmatprep.mubr.msk.f32.mxu1 %vm29_vm0, %v24_v10  ;;  %v27_v16 = vld [vmem:[%s440_s0 + $0x78] sm:$0xff]  ;;  %s343_s0 = smov [#allocation2]  }
   0xb   :  { %s244_s14 = sshll.u32 %s343_s0, 4  ;;  %s245_s14 = int_to_ptr.vmem [resolvable:$true] %s244_s14 }
   0xc   :  { %s319_s15 = scalar_lea.vmem %s245_s14, 2048  ;;  %p324_p1 = scmp.lt.s32.totalorder %s245_s14, %s245_s14 }
   0xd   :  { %297 = vmatmul.mubr.msk.f32.gmra.mrb[4].mxu0 %vm29_vm0, %v17_v11  ;;  %309 = vmatmul.mubr.msk.f32.gmra.mrb[4].mxu1 %vm29_vm0, %v25_v12  ;;  %p320_p0 = scmp.ne.s32.totalorder %s245_s14, %s319_s15  ;;  %p325_p2 = scmp.lt.s32.totalorder %s319_s15, %s319_s15 }
   0xe   :  { %299 = vmatprep.mubr.msk.f32.mxu0 %vm29_vm0, %v18_v13  ;;  %311 = vmatprep.mubr.msk.f32.mxu1 %vm29_vm0, %v26_v14 }
   0xf   :  { %p326_p3 = por %p325_p2, %p324_p1 }
  0x11   :  { %300 = vmatmul.mubr.msk.f32.gmra.mrb[6].mxu0 %vm29_vm0, %v19_v15  ;;  %312 = vmatmul.mubr.msk.f32.gmra.mrb[6].mxu1 %vm29_vm0, %v27_v16  ;;  %p327_p4 = pnand %p326_p3, %p320_p0 }
  0xd8   :  { %v292_v17 = vpop.f32.mrb[0].mxu0  ;;  %v304_v18 = vpop.f32.mrb[0].mxu1 }
  0xd9   :  { %224 = vst [vmem:[#allocation2 + $0x8] sm:$0xff] %v292_v17  ;;  %232 = vst [vmem:[#allocation2 + $0x48] sm:$0xff] %v304_v18  ;;  %v144_v19 = vpop.f32.mrb[1].mxu0  ;;  %v184_v20 = vpop.f32.mrb[1].mxu1 }
  0xda   :  { %223 = vst [vmem:[#allocation2] sm:$0xff] %v144_v19  ;;  %231 = vst [vmem:[#allocation2 + $0x40] sm:$0xff] %v184_v20 }
  0xdc   :  { %v295_v21 = vpop.f32.mrb[2].mxu0  ;;  %v307_v22 = vpop.f32.mrb[2].mxu1 }
  0xdd   :  { %226 = vst [vmem:[#allocation2 + $0x18] sm:$0xff] %v295_v21  ;;  %234 = vst [vmem:[#allocation2 + $0x58] sm:$0xff] %v307_v22  ;;  %v154_v23 = vpop.f32.mrb[3].mxu0  ;;  %v194_v24 = vpop.f32.mrb[3].mxu1 }
  0xde   :  { %225 = vst [vmem:[#allocation2 + $0x10] sm:$0xff] %v154_v23  ;;  %233 = vst [vmem:[#allocation2 + $0x50] sm:$0xff] %v194_v24 }
  0xe0   :  { %v298_v25 = vpop.f32.mrb[4].mxu0  ;;  %v310_v26 = vpop.f32.mrb[4].mxu1 }
  0xe1   :  { %228 = vst [vmem:[#allocation2 + $0x28] sm:$0xff] %v298_v25  ;;  %236 = vst [vmem:[#allocation2 + $0x68] sm:$0xff] %v310_v26  ;;  %v164_v27 = vpop.f32.mrb[5].mxu0  ;;  %v204_v28 = vpop.f32.mrb[5].mxu1 }
  0xe2   :  { %227 = vst [vmem:[#allocation2 + $0x20] sm:$0xff] %v164_v27  ;;  %235 = vst [vmem:[#allocation2 + $0x60] sm:$0xff] %v204_v28 }
  0xe4   :  { %v301_v29 = vpop.f32.mrb[6].mxu0  ;;  %v313_v30 = vpop.f32.mrb[6].mxu1 }
  0xe5   :  { %230 = vst [vmem:[#allocation2 + $0x38] sm:$0xff] %v301_v29  ;;  %238 = vst [vmem:[#allocation2 + $0x78] sm:$0xff] %v313_v30  ;;  %v174_v31 = vpop.f32.mrb[7].mxu0  ;;  %v214_v32 = vpop.f32.mrb[7].mxu1 }
  0xe6   :  { %229 = vst [vmem:[#allocation2 + $0x30] sm:$0xff] %v174_v31  ;;  %237 = vst [vmem:[#allocation2 + $0x70] sm:$0xff] %v214_v32 }
  0xe7   :  { %330 = shalt.err (!%p327_p4)
}
  0xe8   :  { %s331_s18 = scalar_lea.hbm %s442_s2, 2048 }
  0xe9   :  { %p332_p5 = scmp.ne.s32.totalorder %s442_s2, %s331_s18  ;;  %p335_p6 = scmp.lt.u32.totalorder %s331_s18, %s442_s2 }
  0xeb   :  { %p337_p7 = pnand %p335_p6, %p332_p5 }
  0xed   :  { %340 = shalt.err (!%p337_p7)
}
  0xee   :  { %s344_s22 = smov 128   ;;  %s345_s23 = smov 8  }
  0xef   :  { %250 = dma.vmem_to_hbm [thread:$0]  %s245_s14, 2048, %s442_s2, [#allocation3], %s344_s22, %s344_s22, %s345_s23  }
  0xf0   :  { %341 = dma.done.wait [#allocation3], 2048  }
  0xf1   :  { %342 = vsyncadd [#allocation3], 4294965248 }
  0xf2   :  { %254 = vsyncpa [#allocation3], 1 }

</bundles_post_ra>
